<compile_context>
chip_gen: v7x
topology: tpu7x:2x2x1
jax: 0.10.0
libtpu: 0.0.40
codegen_flags: <defaults>
</compile_context>

<pallas_src>
import jax
import jax.numpy as jnp
from jax import lax
from jax.experimental import pallas as pl
from jax.experimental.pallas import tpu as pltpu


LANES = 128      # vreg lane width (last dim)
SUBLANES = 8     # vreg sublane count


def _round_up(x, m):
    return ((x + m - 1) // m) * m


def _tpu_config():
    """Return (base_tile_rows_for_f32, num_tensorcores) for the local TPU."""
    kind = ""
    try:
        kind = (getattr(jax.devices()[0], "device_kind", "") or "").lower()
    except Exception:
        pass
    # TensorCores per device: 2 on v7x, 1 on v5e/v6e (and as a safe default).
    num_cores = 2 if "v7" in kind else 1
    # f32 block rows: 4 MiB/input/block on v6e/v7x (32 MiB default scoped VMEM),
    # 2 MiB on v5e / unknown generations (16 MiB default scoped VMEM).
    base_rows = 8192 if ("v6" in kind or "v7" in kind) else 4096
    return base_rows, num_cores


def attraction_loss(anchor, positive):
    """Mean absolute error between positive and anchor (any matching shapes)."""
    assert anchor.shape == positive.shape, "anchor/positive shapes must match"
    n_elems = anchor.size
    itemsize = jnp.dtype(anchor.dtype).itemsize

    a_flat = jnp.ravel(anchor)
    p_flat = jnp.ravel(positive)

    rows = n_elems // LANES
    main = rows * LANES

    # Tail (< 128 elements) is summed in plain JAX so we never pad / copy the
    # full inputs in HBM.
    if main < n_elems:
        tail_sum = jnp.sum(
            jnp.abs(p_flat[main:].astype(jnp.float32)
                    - a_flat[main:].astype(jnp.float32)))
    else:
        tail_sum = jnp.float32(0.0)

    if rows == 0:
        return (tail_sum / jnp.float32(n_elems)).astype(jnp.float32)

    # Lane-dense 2-D view of the bulk. When n % 128 == 0 this reshape is a free
    # bitcast (no HBM copy).
    if main == n_elems:
        a2d = a_flat.reshape(rows, LANES)
        p2d = p_flat.reshape(rows, LANES)
    else:
        # TODO(synk): for numel % 128 != 0 this slice+reshape cannot fuse into
        # the pallas custom call and may materialize a near-full pre-kernel
        # copy of both inputs; replace with memory_space=pl.ANY + manual
        # chunked DMA (pl.ds) if unaligned sizes matter in production.
        a2d = a_flat[:main].reshape(rows, LANES)
        p2d = p_flat[:main].reshape(rows, LANES)

    base_rows, num_cores = _tpu_config()
    # Keep the block *bytes* constant across dtypes (2x rows for bf16, ...).
    tile_rows_max = base_rows * max(1, 4 // itemsize)
    tile_rows = min(tile_rows_max, _round_up(rows, SUBLANES))
    num_blocks = pl.cdiv(rows, tile_rows)

    # One split per TensorCore, but only if there is enough work to split.
    num_splits = num_cores if (num_cores > 1 and num_blocks >= num_cores) else 1
    bps = pl.cdiv(num_blocks, num_splits)   # blocks per split (inner grid extent)

    ragged = (rows % tile_rows) != 0          # last block has padded rows
    has_dup = (num_blocks % num_splits) != 0  # a split re-reads a clamped block
    needs_mask = ragged or has_dup            # static Python condition

    def kernel(a_ref, p_ref, out_ref):
        s = pl.program_id(0)
        i = pl.program_id(1)

        @pl.when(i == 0)
        def _():
            out_ref[...] = jnp.zeros_like(out_ref)

        diff = jnp.abs(p_ref[...].astype(jnp.float32)
                       - a_ref[...].astype(jnp.float32))

        def accumulate(d):
            # Pure VPU partial reduction into the vreg-shaped resident output.
            out_ref[...] += d.reshape(
                tile_rows // SUBLANES, SUBLANES, LANES).sum(axis=0)

        if not needs_mask:
            accumulate(diff)
        else:
            blk = s * bps + i                       # UNCLAMPED global block id
            is_edge = (blk + 1) * tile_rows > rows  # block has out-of-range rows

            @pl.when(jnp.logical_not(is_edge))
            def _():
                accumulate(diff)

            @pl.when(is_edge)
            def _():
                row_ids = blk * tile_rows + lax.broadcasted_iota(
                    jnp.int32, (tile_rows, LANES), 0)
                # Keep the select (not multiply-by-mask): padded edge rows may
                # contain junk Inf/NaN that a multiply would propagate.
                accumulate(jnp.where(row_ids < rows, diff, 0.0))

    def in_index(s, i):
        # Clamp duplicated trailing blocks of the split into range; their
        # contribution is zeroed by the in-kernel edge mask.
        return (jnp.minimum(s * bps + i, num_blocks - 1), 0)

    partials = pl.pallas_call(
        kernel,
        out_shape=jax.ShapeDtypeStruct((num_splits * SUBLANES, LANES), jnp.float32),
        grid_spec=pltpu.PrefetchScalarGridSpec(
            num_scalar_prefetch=0,
            grid=(num_splits, bps),
            in_specs=[
                pl.BlockSpec((tile_rows, LANES), in_index),
                pl.BlockSpec((tile_rows, LANES), in_index),
            ],
            out_specs=pl.BlockSpec((SUBLANES, LANES), lambda s, i: (s, 0)),
        ),
        compiler_params=pltpu.CompilerParams(
            dimension_semantics=(
                # Only CORE_PARALLEL actually shards a grid axis across
                # TensorCores (v7x); size-1 axis on single-TC chips is a no-op.
                pltpu.CORE_PARALLEL if num_splits > 1 else pltpu.ARBITRARY,
                pltpu.ARBITRARY,
            ),
        ),
        cost_estimate=pl.CostEstimate(
            flops=3 * n_elems,
            transcendentals=0,
            bytes_accessed=2 * n_elems * itemsize
            + num_splits * SUBLANES * LANES * 4,
        ),
    )(a2d, p2d)

    # Single final cross-lane/sublane reduction, done once outside the kernel.
    total = jnp.sum(partials) + tail_sum
    return (total / jnp.float32(n_elems)).astype(jnp.float32)


if __name__ == "__main__":
    key = jax.random.PRNGKey(0)

    # 1) Small NCHW feature-map pair (aligned case: 2*4*16*16 = 2048 = 16 rows).
    k1, k2 = jax.random.split(key)
    anchor = jax.random.normal(k1, (2, 4, 16, 16), dtype=jnp.float32)
    positive = jax.random.normal(k2, (2, 4, 16, 16), dtype=jnp.float32)

    loss = attraction_loss(anchor, positive)
    jax.block_until_ready(loss)
    ref = jnp.mean(jnp.abs(positive - anchor))
    assert jnp.allclose(loss, ref, rtol=1e-5, atol=1e-6), (loss, ref)

    # 2) Unaligned shape: exercises the gated edge mask + plain-JAX tail path.
    k3, k4 = jax.random.split(k2)
    anchor2 = jax.random.normal(k3, (2, 3, 33, 37), dtype=jnp.float32)
    positive2 = jax.random.normal(k4, (2, 3, 33, 37), dtype=jnp.float32)

    loss2 = attraction_loss(anchor2, positive2)
    jax.block_until_ready(loss2)
    ref2 = jnp.mean(jnp.abs(positive2 - anchor2))
    assert jnp.allclose(loss2, ref2, rtol=1e-5, atol=1e-6), (loss2, ref2)

    print("KERNEL_OK")
</pallas_src>

<mosaic_0001>
module attributes {stable_mosaic.version = 11 : i64} {
  func.func @kernel(%arg0: i32, %arg1: i32, %arg2: memref<16x128xf32, #tpu.memory_space<vmem>>, %arg3: memref<16x128xf32, #tpu.memory_space<vmem>>, %arg4: memref<8x128xf32, #tpu.memory_space<vmem>>) attributes {dimension_semantics = [#tpu.dimension_semantics<arbitrary>, #tpu.dimension_semantics<arbitrary>], iteration_bounds = array<i64: 1, 1>, scalar_prefetch = 0 : i64, scratch_operands = 0 : i64, tpu.core_type = #tpu.core_type<tc>, window_params = [{transform_indices = @transform_0, window_bounds = array<i64: 16, 128>}, {transform_indices = @transform_1, window_bounds = array<i64: 16, 128>}, {transform_indices = @transform_2, window_bounds = array<i64: 8, 128>}]} {
    %c0_i32 = arith.constant 0 : i32
    %0 = arith.cmpi eq, %arg1, %c0_i32 : i32
    %1 = arith.extui %0 : i1 to i32
    %c0_i32_0 = arith.constant 0 : i32
    %2 = arith.cmpi ne, %1, %c0_i32_0 : i32
    scf.if %2 {
      %cst_8 = arith.constant 0.000000e+00 : f32
      %12 = vector.broadcast %cst_8 : f32 to vector<8x128xf32>
      %c0_9 = arith.constant 0 : index
      %c0_10 = arith.constant 0 : index
      %13 = vector.load %arg4[%c0_9, %c0_10] : memref<8x128xf32, #tpu.memory_space<vmem>>, vector<8x128xf32>
      tpu.vector_store %arg4[%c0_9, %c0_10], %12 {strides = array<i32>} : memref<8x128xf32, #tpu.memory_space<vmem>>, vector<8x128xf32>,
    } else {
    }
    %c0 = arith.constant 0 : index
    %c0_1 = arith.constant 0 : index
    %3 = vector.load %arg3[%c0, %c0_1] : memref<16x128xf32, #tpu.memory_space<vmem>>, vector<16x128xf32>
    %c0_2 = arith.constant 0 : index
    %c0_3 = arith.constant 0 : index
    %4 = vector.load %arg2[%c0_2, %c0_3] : memref<16x128xf32, #tpu.memory_space<vmem>>, vector<16x128xf32>
    %5 = arith.subf %3, %4 : vector<16x128xf32>
    %6 = math.absf %5 : vector<16x128xf32>
    %c0_4 = arith.constant 0 : index
    %c0_5 = arith.constant 0 : index
    %7 = vector.load %arg4[%c0_4, %c0_5] : memref<8x128xf32, #tpu.memory_space<vmem>>, vector<8x128xf32>
    %8 = vector.shape_cast %6 : vector<16x128xf32> to vector<2x8x128xf32>
    %cst = arith.constant dense<0.000000e+00> : vector<8x128xf32>
    %9 = vector.multi_reduction <add>, %8, %cst [0] : vector<2x8x128xf32> to vector<8x128xf32>
    %10 = arith.addf %7, %9 : vector<8x128xf32>
    %c0_6 = arith.constant 0 : index
    %c0_7 = arith.constant 0 : index
    %11 = vector.load %arg4[%c0_6, %c0_7] : memref<8x128xf32, #tpu.memory_space<vmem>>, vector<8x128xf32>
    tpu.vector_store %arg4[%c0_6, %c0_7], %10 {strides = array<i32>} : memref<8x128xf32, #tpu.memory_space<vmem>>, vector<8x128xf32>,
    return
  }
  func.func @transform_0(%arg0: i32, %arg1: i32) -> (i32, i32) {
    %c1_i32 = arith.constant 1 : i32
    %0 = arith.muli %arg0, %c1_i32 : i32
    %1 = arith.addi %0, %arg1 : i32
    %c0_i32 = arith.constant 0 : i32
    %2 = arith.minsi %1, %c0_i32 : i32
    %c0_i32_0 = arith.constant 0 : i32
    %c0_i32_1 = arith.constant 0 : i32
    return %2, %c0_i32_0 : i32, i32
  }
  func.func @transform_1(%arg0: i32, %arg1: i32) -> (i32, i32) {
    %c1_i32 = arith.constant 1 : i32
    %0 = arith.muli %arg0, %c1_i32 : i32
    %1 = arith.addi %0, %arg1 : i32
    %c0_i32 = arith.constant 0 : i32
    %2 = arith.minsi %1, %c0_i32 : i32
    %c0_i32_0 = arith.constant 0 : i32
    %c0_i32_1 = arith.constant 0 : i32
    return %2, %c0_i32_0 : i32, i32
  }
  func.func @transform_2(%arg0: i32, %arg1: i32) -> (i32, i32) {
    %c0_i32 = arith.constant 0 : i32
    %c0_i32_0 = arith.constant 0 : i32
    return %arg0, %c0_i32 : i32, i32
  }
}

</mosaic_0001>

<bundles_post_ra>
// kernel: tpu_custom_call.1
= control target key start
LH: loop header
LB: loop body
LE: loop exit
PB: predicated region body
PF: predicated region fallthrough
CT: control target
= control target key end

     0   :  { %7 = vsyncpa [#allocation3], 0  ;;  %s231_s0 = inlined_call_operand.hbm [shape: f32[16,128], index: 0, kind: input, shape index: {}]   ;;  %s232_s1 = inlined_call_operand.hbm [shape: f32[16,128], index: 1, kind: input, shape index: {}]   ;;  %s233_s2 = inlined_call_operand.hbm [shape: f32[8,128], index: 2, kind: output, shape index: {}]  }
   0x1   :  { %8 = vsyncpa [#allocation6], 0 }
   0x2   :  { %9 = vsyncpa [#allocation4], 0  ;;  %s175_s9 = smov [#allocation2]   ;;  %s103_s13 = scalar_lea.hbm %s231_s0, 256 }
   0x3   :  { %s21_s10 = sshll.u32 %s175_s9, 4  ;;  %p104_p0 = scmp.ne.s32.totalorder %s231_s0, %s103_s13  ;;  %s22_s10 = int_to_ptr.vmem [resolvable:$true] %s21_s10 }
   0x4   :  { %p107_p1 = scmp.lt.u32.totalorder %s103_s13, %s231_s0 }
   0x6   :  { %p109_p2 = pnand %p107_p1, %p104_p0 }
   0x8   :  { %112 = shalt.err (!%p109_p2)
}
   0x9   :  { %s113_s18 = scalar_lea.vmem %s22_s10, 256  ;;  %p118_p4 = scmp.lt.s32.totalorder %s22_s10, %s22_s10 }
   0xa   :  { %p114_p3 = scmp.ne.s32.totalorder %s22_s10, %s113_s18  ;;  %p119_p5 = scmp.lt.s32.totalorder %s113_s18, %s113_s18 }
   0xc   :  { %p120_p6 = por %p119_p5, %p118_p4 }
   0xe   :  { %p121_p7 = pnand %p120_p6, %p114_p3 }
  0x10   :  { %124 = shalt.err (!%p121_p7)
}
  0x11   :  { %s176_s19 = smov 128   ;;  %s177_s20 = smov 8  }
  0x12   :  { %27 = dma.hbm_to_vmem [thread:$0]  %s231_s0, 256, %s22_s10, [#allocation3], %s176_s19, %s176_s19, %s177_s20  }
  0x13   :  { %s178_s23 = smov [#allocation5]   ;;  %s125_s27 = scalar_lea.hbm %s232_s1, 256 }
  0x14   :  { %s39_s24 = sshll.u32 %s178_s23, 4  ;;  %p126_p8 = scmp.ne.s32.totalorder %s232_s1, %s125_s27  ;;  %s40_s24 = int_to_ptr.vmem [resolvable:$true] %s39_s24 }
  0x15   :  { %p129_p9 = scmp.lt.u32.totalorder %s125_s27, %s232_s1 }
  0x17   :  { %p131_p10 = pnand %p129_p9, %p126_p8 }
  0x19   :  { %134 = shalt.err (!%p131_p10)
}
  0x1a   :  { %s135_s4 = scalar_lea.vmem %s40_s24, 256  ;;  %p140_p12 = scmp.lt.s32.totalorder %s40_s24, %s40_s24 }
  0x1b   :  { %p136_p11 = scmp.ne.s32.totalorder %s40_s24, %s135_s4  ;;  %p141_p13 = scmp.lt.s32.totalorder %s135_s4, %s135_s4 }
  0x1d   :  { %p142_p0 = por %p141_p13, %p140_p12 }
  0x1f   :  { %p143_p1 = pnand %p142_p0, %p136_p11 }
  0x21   :  { %146 = shalt.err (!%p143_p1)
}
  0x22   :  { %45 = dma.hbm_to_vmem [thread:$0]  %s232_s1, 256, %s40_s24, [#allocation6], %s176_s19, %s176_s19, %s177_s20  }
  0x23   :  { %169 = dma.done.wait [#allocation3], 256  }
  0x24   :  { %170 = vsyncadd [#allocation3], 4294967040 }
  0x25   :  { %171 = dma.done.wait [#allocation6], 256  }
  0x26   :  { %172 = vsyncadd [#allocation6], 4294967040  ;;  %v65_v0 = vld [vmem:[#allocation5] sm:$0xff]  ;;  %v66_v1 = vld [vmem:[#allocation5 + $0x8] sm:$0xff]  ;;  %s179_s6 = smov [#allocation7]  }
  0x27   :  { %v67_v2 = vld [vmem:[#allocation2] sm:$0xff]  ;;  %v68_v3 = vld [vmem:[#allocation2 + $0x8] sm:$0xff]  ;;  %s83_s7 = sshll.u32 %s179_s6, 4  ;;  %s84_s7 = int_to_ptr.vmem [resolvable:$true] %s83_s7 }
  0x28   :  { %v69_v4 = vsub.f32 %v65_v0, %v67_v2  ;;  %v70_v5 = vsub.f32 %v66_v1, %v68_v3  ;;  %s147_s8 = scalar_lea.vmem %s84_s7, 128  ;;  %p152_p3 = scmp.lt.s32.totalorder %s84_s7, %s84_s7 }
  0x29   :  { %p148_p2 = scmp.ne.s32.totalorder %s84_s7, %s147_s8  ;;  %p153_p4 = scmp.lt.s32.totalorder %s147_s8, %s147_s8 }
  0x2a   :  { %v71_v6 = vand.u32 2147483647, %v69_v4  ;;  %v72_v7 = vand.u32 2147483647, %v70_v5 }
  0x2b   :  { %p154_p5 = por %p153_p4, %p152_p3 }
  0x2c   :  { %v74_v8 = vadd.f32 %v72_v7, %v71_v6 }
  0x2d   :  { %p155_p6 = pnand %p154_p5, %p148_p2 }
  0x2e   :  { %76 = vst [vmem:[#allocation7] sm:$0xff] %v74_v8 }
  0x2f   :  { %158 = shalt.err (!%p155_p6)
}
  0x30   :  { %s159_s10 = scalar_lea.hbm %s233_s2, 128 }
  0x31   :  { %p160_p7 = scmp.ne.s32.totalorder %s233_s2, %s159_s10  ;;  %p163_p8 = scmp.lt.u32.totalorder %s159_s10, %s233_s2 }
  0x33   :  { %p165_p9 = pnand %p163_p8, %p160_p7 }
  0x35   :  { %168 = shalt.err (!%p165_p9)
}
  0x36   :  { %86 = dma.vmem_to_hbm [thread:$0]  %s84_s7, 128, %s233_s2, [#allocation4]  }
  0x37   :  { %173 = dma.done.wait [#allocation4], 128  }
  0x38   :  { %174 = vsyncadd [#allocation4], 4294967168 }
  0x39   :  { %90 = vsyncpa [#allocation3], 1 }
  0x3a   :  { %91 = vsyncpa [#allocation6], 1 }
  0x3b   :  { %92 = vsyncpa [#allocation4], 1 }

</bundles_post_ra>
